<compile_context>
chip_gen: v7x
topology: tpu7x:2x2x1
jax: 0.10.0
libtpu: 0.0.40
codegen_flags: <defaults>
</compile_context>

<pallas_src>
import functools

import jax
import jax.numpy as jnp
import numpy as np
from jax.experimental import pallas as pl
from jax.experimental.pallas import tpu as pltpu


# ---------------------------------------------------------------------------
# In-kernel helpers
# ---------------------------------------------------------------------------
def _project(x, w_ref, b_ref, cd):
    """x (T, D) already in matmul dtype -> (T, N), f32 accumulate, cast once."""
    return (jnp.dot(x, w_ref[...], preferred_element_type=jnp.float32)
            + b_ref[...]).astype(cd)


def _attn_tail(q, k, v, w_o_ref, b_o_ref, out_ref, *,
               n_heads, d_head, cd, exp_dtype, approx_recip):
    """q (Tq, H*dh), k/v (S, H*dh) values already in matmul dtype `cd`.

    Per-head softmax(q k^T) v; per-head z collected in registers and
    concatenated lane-dense (no masked sub-128-lane stores), then a single
    K=H*dh output projection and a single lane-dense output write.
    """
    z_heads = []
    for h in range(n_heads):
        sl = slice(h * d_head, (h + 1) * d_head)
        s = jax.lax.dot_general(q[:, sl], k[:, sl], (((1,), (1,)), ((), ())),
                                preferred_element_type=jnp.float32)   # (Tq, S)
        m = jnp.max(s, axis=-1, keepdims=True)
        # exp in exp_dtype (bf16 on v6e/v7x ~doubles EUP throughput); the max
        # and the denominator accumulation stay in f32.
        e = jnp.exp((s - m).astype(exp_dtype))
        denom = jnp.sum(e, axis=-1, keepdims=True, dtype=jnp.float32)
        inv = pl.reciprocal(denom, approx=approx_recip)               # EUP slot
        p = (e * inv.astype(exp_dtype)).astype(cd)
        # TODO(synk): additive attention_mask not implemented (mask=None path
        # only); with mask=None denom >= 1 so torch's isnan->0 select is a
        # no-op and is omitted.
        z_heads.append(jnp.dot(p, v[:, sl], preferred_element_type=jnp.float32))
    z = jnp.concatenate(z_heads, axis=-1)                              # (Tq, H*dh)
    out = jnp.dot(z.astype(cd), w_o_ref[...],
                  preferred_element_type=jnp.float32) + b_o_ref[...]
    out_ref[...] = out[None, :, :].astype(out_ref.dtype)


# ---------------------------------------------------------------------------
# Kernel variants
# ---------------------------------------------------------------------------
def _kernel_self_fused(x_ref, w_qkv_ref, w_o_ref, b_qkv_ref, b_o_ref, out_ref,
                       *, n_heads, d_head, cd, exp_dtype, approx_recip):
    """Self-attention, block_q == S: one fused (D, 3*H*dh) projection."""
    Hd = n_heads * d_head
    x = x_ref[0].astype(cd)                               # (S, D), cast once
    qkv = _project(x, w_qkv_ref, b_qkv_ref, cd)           # single MXU pass
    q = qkv[:, :Hd]
    k = qkv[:, Hd:2 * Hd]
    v = qkv[:, 2 * Hd:]
    _attn_tail(q, k, v, w_o_ref, b_o_ref, out_ref,
               n_heads=n_heads, d_head=d_head, cd=cd,
               exp_dtype=exp_dtype, approx_recip=approx_recip)


def _kernel_self_tiled(x_ref, w_q_ref, w_kv_ref, w_o_ref,
                       b_q_ref, b_kv_ref, b_o_ref, out_ref,
                       *, n_heads, d_head, block_q, cd, exp_dtype, approx_recip):
    """Self-attention with a query tile smaller than S: fused K/V slab."""
    Hd = n_heads * d_head
    x = x_ref[0].astype(cd)                               # (S, D)
    qi = pl.program_id(1)
    start = pl.multiple_of(qi * block_q, block_q)
    xq = x_ref[0, pl.ds(start, block_q), :].astype(cd)    # (block_q, D)
    kv = _project(x, w_kv_ref, b_kv_ref, cd)              # (S, 2*Hd)
    q = _project(xq, w_q_ref, b_q_ref, cd)                # (block_q, Hd)
    _attn_tail(q, kv[:, :Hd], kv[:, Hd:], w_o_ref, b_o_ref, out_ref,
               n_heads=n_heads, d_head=d_head, cd=cd,
               exp_dtype=exp_dtype, approx_recip=approx_recip)


def _kernel_cross(xq_ref, xkv_ref, w_q_ref, w_kv_ref, w_o_ref,
                  b_q_ref, b_kv_ref, b_o_ref, out_ref,
                  *, n_heads, d_head, cd, exp_dtype, approx_recip):
    """key_input == value_input != query_input: fused K/V slab."""
    Hd = n_heads * d_head
    q = _project(xq_ref[0].astype(cd), w_q_ref, b_q_ref, cd)
    kv = _project(xkv_ref[0].astype(cd), w_kv_ref, b_kv_ref, cd)
    _attn_tail(q, kv[:, :Hd], kv[:, Hd:], w_o_ref, b_o_ref, out_ref,
               n_heads=n_heads, d_head=d_head, cd=cd,
               exp_dtype=exp_dtype, approx_recip=approx_recip)


def _kernel_general(xq_ref, xk_ref, xv_ref, w_q_ref, w_k_ref, w_v_ref, w_o_ref,
                    b_q_ref, b_k_ref, b_v_ref, b_o_ref, out_ref,
                    *, n_heads, d_head, cd, exp_dtype, approx_recip):
    """Fully distinct query / key / value inputs."""
    q = _project(xq_ref[0].astype(cd), w_q_ref, b_q_ref, cd)
    k = _project(xk_ref[0].astype(cd), w_k_ref, b_k_ref, cd)
    v = _project(xv_ref[0].astype(cd), w_v_ref, b_v_ref, cd)
    _attn_tail(q, k, v, w_o_ref, b_o_ref, out_ref,
               n_heads=n_heads, d_head=d_head, cd=cd,
               exp_dtype=exp_dtype, approx_recip=approx_recip)


# ---------------------------------------------------------------------------
# Host wrapper
# ---------------------------------------------------------------------------
def attention_forward(query_input, key_input, value_input,
                      W_Q, W_K, W_V, W_O, b_Q, b_K, b_V, b_O,
                      *, use_attn_scale=True, block_q=None,
                      matmul_dtype=jnp.bfloat16, exp_dtype=None,
                      approx_recip=None, weight_buffer_count=None,
                      vmem_limit_bytes=None):
    """vit_prisma Attention.forward.

    Pass key_input / value_input as None for self-attention (shared residual
    stream -> 1/3 the input DMA and a fully fused QKV projection). This is
    jit-friendly, unlike object-identity detection.

    Architecture notes:
      * v5e: keep matmul_dtype=bf16, exp_dtype=f32, block_q 128-256; consider
        weight_buffer_count=1 / vmem_limit_bytes (16 MiB scoped default).
      * v6e: block_q 256+ fills the 256x256 MXU; bf16 exp (default) doubles
        EUP throughput.
      * v7x: bf16 matmuls + weight_buffer_count=1 keep ViT-L weight slabs
        within the 64 MiB VMEM; block_q<=256 keeps both TensorCores busy.
    """
    B, Sq, D = query_input.shape
    H, _, dh = W_Q.shape
    Hd = H * dh
    cd = matmul_dtype
    if exp_dtype is None:
        exp_dtype = matmul_dtype
    if approx_recip is None:
        approx_recip = (matmul_dtype != jnp.float32)
    inv_scale = (1.0 / float(np.sqrt(dh))) if use_attn_scale else 1.0

    # Dispatch: self / cross (k==v) / general.
    if (key_input is None and value_input is None) or \
       (key_input is query_input and value_input is query_input):
        mode = "self"
        key_input = value_input = query_input
    elif value_input is None or value_input is key_input:
        mode = "cross"
        value_input = key_input
    else:
        mode = "general"
        if key_input is None:
            key_input = query_input
    Sk = key_input.shape[1]

    # Query-axis tile (second grid axis, "parallel" -> megacore shardable).
    if block_q is None:
        block_q = 256 if (Sq % 256 == 0) else Sq
    if block_q > Sq or Sq % block_q != 0 or block_q % 8 != 0:
        block_q = Sq
    nq = Sq // block_q

    # Lane-dense weight slabs; attention scale folded into W_Q / b_Q so the
    # kernel never multiplies q (or scores) by 1/sqrt(d_head).
    def slab(W):                     # (H, D, dh) -> (D, H*dh)
        return jnp.transpose(W, (1, 0, 2)).reshape(D, Hd)

    wq = (slab(W_Q) * inv_scale).astype(cd)
    wk = slab(W_K).astype(cd)
    wv = slab(W_V).astype(cd)
    wo = W_O.reshape(Hd, D).astype(cd)
    bq = (b_Q.reshape(1, Hd) * inv_scale).astype(jnp.float32)
    bk = b_K.reshape(1, Hd).astype(jnp.float32)
    bv = b_V.reshape(1, Hd).astype(jnp.float32)
    bo = b_O.reshape(1, D).astype(jnp.float32)

    def wspec(shape):
        kwargs = {}
        if weight_buffer_count is not None:
            # Constant index_map -> double buffering buys nothing; single
            # buffering halves resident weight VMEM (ViT-L on v7x / v5e).
            kwargs["pipeline_mode"] = pl.Buffered(weight_buffer_count)
        return pl.BlockSpec(shape, lambda b, qi: (0, 0), **kwargs)

    common = dict(n_heads=H, d_head=dh, cd=cd,
                  exp_dtype=exp_dtype, approx_recip=approx_recip)

    if mode == "self" and block_q == Sq:
        kernel = functools.partial(_kernel_self_fused, **common)
        w_qkv = jnp.concatenate([wq, wk, wv], axis=1)         # (D, 3*Hd)
        b_qkv = jnp.concatenate([bq, bk, bv], axis=1)         # (1, 3*Hd)
        inputs = (query_input, w_qkv, wo, b_qkv, bo)
        in_specs = [pl.BlockSpec((1, Sq, D), lambda b, qi: (b, 0, 0)),
                    wspec((D, 3 * Hd)), wspec((Hd, D)),
                    wspec((1, 3 * Hd)), wspec((1, D))]
    elif mode == "self":
        kernel = functools.partial(_kernel_self_tiled, block_q=block_q, **common)
        w_kv = jnp.concatenate([wk, wv], axis=1)              # (D, 2*Hd)
        b_kv = jnp.concatenate([bk, bv], axis=1)
        inputs = (query_input, wq, w_kv, wo, bq, b_kv, bo)
        in_specs = [pl.BlockSpec((1, Sq, D), lambda b, qi: (b, 0, 0)),
                    wspec((D, Hd)), wspec((D, 2 * Hd)), wspec((Hd, D)),
                    wspec((1, Hd)), wspec((1, 2 * Hd)), wspec((1, D))]
    elif mode == "cross":
        kernel = functools.partial(_kernel_cross, **common)
        w_kv = jnp.concatenate([wk, wv], axis=1)
        b_kv = jnp.concatenate([bk, bv], axis=1)
        inputs = (query_input, key_input, wq, w_kv, wo, bq, b_kv, bo)
        in_specs = [pl.BlockSpec((1, block_q, D), lambda b, qi: (b, qi, 0)),
                    pl.BlockSpec((1, Sk, D), lambda b, qi: (b, 0, 0)),
                    wspec((D, Hd)), wspec((D, 2 * Hd)), wspec((Hd, D)),
                    wspec((1, Hd)), wspec((1, 2 * Hd)), wspec((1, D))]
    else:  # general
        kernel = functools.partial(_kernel_general, **common)
        inputs = (query_input, key_input, value_input,
                  wq, wk, wv, wo, bq, bk, bv, bo)
        in_specs = [pl.BlockSpec((1, block_q, D), lambda b, qi: (b, qi, 0)),
                    pl.BlockSpec((1, Sk, D), lambda b, qi: (b, 0, 0)),
                    pl.BlockSpec((1, Sk, D), lambda b, qi: (b, 0, 0)),
                    wspec((D, Hd)), wspec((D, Hd)), wspec((D, Hd)),
                    wspec((Hd, D)),
                    wspec((1, Hd)), wspec((1, Hd)), wspec((1, Hd)),
                    wspec((1, D))]

    return pl.pallas_call(
        kernel,
        out_shape=jax.ShapeDtypeStruct((B, Sq, D), query_input.dtype),
        grid_spec=pltpu.PrefetchScalarGridSpec(
            num_scalar_prefetch=0,
            grid=(B, nq),
            in_specs=in_specs,
            out_specs=pl.BlockSpec((1, block_q, D), lambda b, qi: (b, qi, 0)),
        ),
        compiler_params=pltpu.CompilerParams(
            dimension_semantics=("parallel", "parallel"),
            vmem_limit_bytes=vmem_limit_bytes),
    )(*inputs)


# ---------------------------------------------------------------------------
# Pure-JAX reference (mirrors the torch module)
# ---------------------------------------------------------------------------
def attention_reference(q_in, k_in, v_in, W_Q, W_K, W_V, W_O,
                        b_Q, b_K, b_V, b_O, attn_scale):
    q = jnp.einsum('bpd,hdf->bphf', q_in, W_Q) + b_Q
    k = jnp.einsum('bpd,hdf->bphf', k_in, W_K) + b_K
    v = jnp.einsum('bpd,hdf->bphf', v_in, W_V) + b_V
    scores = jnp.einsum('bqhf,bkhf->bhqk', q, k) / attn_scale
    pattern = jax.nn.softmax(scores, axis=-1)
    pattern = jnp.where(jnp.isnan(pattern), 0.0, pattern)
    z = jnp.einsum('bkhf,bhqk->bqhf', v, pattern)
    out = jnp.einsum('bqhf,hfd->bqd', z, W_O) + b_O
    return out


if __name__ == "__main__":
    # Small deterministic config: batch=2, pos=16, d_model=32, n_heads=4, d_head=8
    B, S, D, H, dh = 2, 16, 32, 4, 8
    key = jax.random.PRNGKey(0)
    keys = jax.random.split(key, 11)
    (kx, kx2, kx3, kq, kk, kv, ko, kbq, kbk, kbv, kbo) = keys

    x = jax.random.normal(kx, (B, S, D), dtype=jnp.float32)
    x_kv = jax.random.normal(kx2, (B, S, D), dtype=jnp.float32)
    x_v = jax.random.normal(kx3, (B, S, D), dtype=jnp.float32)
    W_Q = jax.random.normal(kq, (H, D, dh), dtype=jnp.float32) * 0.1
    W_K = jax.random.normal(kk, (H, D, dh), dtype=jnp.float32) * 0.1
    W_V = jax.random.normal(kv, (H, D, dh), dtype=jnp.float32) * 0.1
    W_O = jax.random.normal(ko, (H, dh, D), dtype=jnp.float32) * 0.1
    b_Q = jax.random.normal(kbq, (H, dh), dtype=jnp.float32) * 0.01
    b_K = jax.random.normal(kbk, (H, dh), dtype=jnp.float32) * 0.01
    b_V = jax.random.normal(kbv, (H, dh), dtype=jnp.float32) * 0.01
    b_O = jax.random.normal(kbo, (D,), dtype=jnp.float32) * 0.01
    attn_scale = float(np.sqrt(dh))
    weights = (W_Q, W_K, W_V, W_O, b_Q, b_K, b_V, b_O)

    ref_self = attention_reference(x, x, x, *weights, attn_scale)

    # jit the wrapper so the host-side slab prep (transpose/reshape/concat/cast)
    # fuses with the weights instead of re-running as standalone ops per call.
    fwd_f32 = jax.jit(functools.partial(attention_forward,
                                        matmul_dtype=jnp.float32))
    fwd_bf16_tiled = jax.jit(functools.partial(attention_forward, block_q=8))
    fwd_f32_tiled = jax.jit(functools.partial(attention_forward,
                                              matmul_dtype=jnp.float32,
                                              block_q=8))

    # 1) Self-attention, fused QKV slab, f32 matmuls, exact reciprocal.
    out = jax.block_until_ready(fwd_f32(x, None, None, *weights))
    np.testing.assert_allclose(np.asarray(out), np.asarray(ref_self),
                               rtol=5e-3, atol=5e-3)

    # 2) Self-attention, q-axis tiled (block_q=8), bf16 matmuls + bf16 exp.
    out_bf16 = jax.block_until_ready(fwd_bf16_tiled(x, None, None, *weights))
    np.testing.assert_allclose(np.asarray(out_bf16), np.asarray(ref_self),
                               rtol=5e-2, atol=5e-2)

    # 3) Cross-attention (key == value != query), fused KV slab, f32, tiled.
    ref_cross = attention_reference(x, x_kv, x_kv, *weights, attn_scale)
    out_cross = jax.block_until_ready(fwd_f32_tiled(x, x_kv, None, *weights))
    np.testing.assert_allclose(np.asarray(out_cross), np.asarray(ref_cross),
                               rtol=5e-3, atol=5e-3)

    # 4) Fully distinct query / key / value inputs (general path), f32.
    ref_gen = attention_reference(x, x_kv, x_v, *weights, attn_scale)
    out_gen = jax.block_until_ready(fwd_f32(x, x_kv, x_v, *weights))
    np.testing.assert_allclose(np.asarray(out_gen), np.asarray(ref_gen),
                               rtol=5e-3, atol=5e-3)

    print("KERNEL_OK")
</pallas_src>

<mosaic_0001>
module attributes {stable_mosaic.version = 11 : i64} {
  func.func @_kernel_self_fused(%arg0: i32, %arg1: i32, %arg2: memref<1x16x32xf32, #tpu.memory_space<vmem>>, %arg3: memref<32x96xf32, #tpu.memory_space<vmem>>, %arg4: memref<32x32xf32, #tpu.memory_space<vmem>>, %arg5: memref<1x96xf32, #tpu.memory_space<vmem>>, %arg6: memref<1x32xf32, #tpu.memory_space<vmem>>, %arg7: memref<1x16x32xf32, #tpu.memory_space<vmem>>) attributes {dimension_semantics = [#tpu.dimension_semantics<parallel>, #tpu.dimension_semantics<parallel>], iteration_bounds = array<i64: 2, 1>, scalar_prefetch = 0 : i64, scratch_operands = 0 : i64, tpu.core_type = #tpu.core_type<tc>, window_params = [{transform_indices = @transform_0, window_bounds = array<i64: 1, 16, 32>}, {pipeline_mode = #tpu.pipeline_mode<synchronous>, transform_indices = @transform_1, window_bounds = array<i64: 32, 96>}, {pipeline_mode = #tpu.pipeline_mode<synchronous>, transform_indices = @transform_2, window_bounds = array<i64: 32, 32>}, {pipeline_mode = #tpu.pipeline_mode<synchronous>, transform_indices = @transform_3, window_bounds = array<i64: 1, 96>}, {pipeline_mode = #tpu.pipeline_mode<synchronous>, transform_indices = @transform_4, window_bounds = array<i64: 1, 32>}, {transform_indices = @transform_5, window_bounds = array<i64: 1, 16, 32>}]} {
    %c0 = arith.constant 0 : index
    %c0_0 = arith.constant 0 : index
    %c0_1 = arith.constant 0 : index
    %0 = vector.load %arg2[%c0, %c0_0, %c0_1] : memref<1x16x32xf32, #tpu.memory_space<vmem>>, vector<1x16x32xf32>
    %1 = vector.shape_cast %0 : vector<1x16x32xf32> to vector<16x32xf32>
    %c0_2 = arith.constant 0 : index
    %c0_3 = arith.constant 0 : index
    %2 = vector.load %arg3[%c0_2, %c0_3] : memref<32x96xf32, #tpu.memory_space<vmem>>, vector<32x96xf32>
    %cst = arith.constant dense<0.000000e+00> : vector<16x96xf32>
    %3 = tpu.matmul %1, %2, %cst {dimension_numbers = #tpu.dot_dimension_numbers<[1], [0], [0], [1], [0, 0, 1, 1], [], []>} : vector<16x32xf32>, vector<32x96xf32>, vector<16x96xf32> -> vector<16x96xf32>
    %c0_4 = arith.constant 0 : index
    %c0_5 = arith.constant 0 : index
    %4 = vector.load %arg5[%c0_4, %c0_5] : memref<1x96xf32, #tpu.memory_space<vmem>>, vector<1x96xf32>
    %5 = vector.broadcast %4 : vector<1x96xf32> to vector<16x96xf32>
    %6 = arith.addf %3, %5 : vector<16x96xf32>
    %7 = vector.extract_strided_slice %6 {offsets = [0, 0], sizes = [16, 32], strides = [1, 1]} : vector<16x96xf32> to vector<16x32xf32>
    %8 = vector.extract_strided_slice %6 {offsets = [0, 32], sizes = [16, 32], strides = [1, 1]} : vector<16x96xf32> to vector<16x32xf32>
    %9 = vector.extract_strided_slice %6 {offsets = [0, 64], sizes = [16, 32], strides = [1, 1]} : vector<16x96xf32> to vector<16x32xf32>
    %10 = vector.extract_strided_slice %7 {offsets = [0, 0], sizes = [16, 8], strides = [1, 1]} : vector<16x32xf32> to vector<16x8xf32>
    %11 = vector.extract_strided_slice %8 {offsets = [0, 0], sizes = [16, 8], strides = [1, 1]} : vector<16x32xf32> to vector<16x8xf32>
    %cst_6 = arith.constant dense<0.000000e+00> : vector<16x16xf32>
    %12 = tpu.matmul %10, %11, %cst_6 {dimension_numbers = #tpu.dot_dimension_numbers<[1], [1], [0], [0], [0, 0, 1, 0], [], []>} : vector<16x8xf32>, vector<16x8xf32>, vector<16x16xf32> -> vector<16x16xf32>
    %cst_7 = arith.constant dense<0xFF800000> : vector<16xf32>
    %13 = vector.multi_reduction <maximumf>, %12, %cst_7 [1] : vector<16x16xf32> to vector<16xf32>
    %14 = vector.shape_cast %13 : vector<16xf32> to vector<16x1xf32>
    %15 = vector.broadcast %14 : vector<16x1xf32> to vector<16x16xf32>
    %16 = arith.subf %12, %15 : vector<16x16xf32>
    %17 = math.exp %16 : vector<16x16xf32>
    %cst_8 = arith.constant dense<0.000000e+00> : vector<16xf32>
    %18 = vector.multi_reduction <add>, %17, %cst_8 [1] : vector<16x16xf32> to vector<16xf32>
    %19 = vector.shape_cast %18 : vector<16xf32> to vector<16x1xf32>
    %20 = tpu.reciprocal %19 : vector<16x1xf32> -> vector<16x1xf32>
    %21 = vector.broadcast %20 : vector<16x1xf32> to vector<16x16xf32>
    %22 = arith.mulf %17, %21 : vector<16x16xf32>
    %23 = vector.extract_strided_slice %9 {offsets = [0, 0], sizes = [16, 8], strides = [1, 1]} : vector<16x32xf32> to vector<16x8xf32>
    %cst_9 = arith.constant dense<0.000000e+00> : vector<16x8xf32>
    %24 = tpu.matmul %22, %23, %cst_9 {dimension_numbers = #tpu.dot_dimension_numbers<[1], [0], [0], [1], [0, 0, 1, 1], [], []>} : vector<16x16xf32>, vector<16x8xf32>, vector<16x8xf32> -> vector<16x8xf32>
    %25 = vector.extract_strided_slice %7 {offsets = [0, 8], sizes = [16, 8], strides = [1, 1]} : vector<16x32xf32> to vector<16x8xf32>
    %26 = vector.extract_strided_slice %8 {offsets = [0, 8], sizes = [16, 8], strides = [1, 1]} : vector<16x32xf32> to vector<16x8xf32>
    %cst_10 = arith.constant dense<0.000000e+00> : vector<16x16xf32>
    %27 = tpu.matmul %25, %26, %cst_10 {dimension_numbers = #tpu.dot_dimension_numbers<[1], [1], [0], [0], [0, 0, 1, 0], [], []>} : vector<16x8xf32>, vector<16x8xf32>, vector<16x16xf32> -> vector<16x16xf32>
    %cst_11 = arith.constant dense<0xFF800000> : vector<16xf32>
    %28 = vector.multi_reduction <maximumf>, %27, %cst_11 [1] : vector<16x16xf32> to vector<16xf32>
    %29 = vector.shape_cast %28 : vector<16xf32> to vector<16x1xf32>
    %30 = vector.broadcast %29 : vector<16x1xf32> to vector<16x16xf32>
    %31 = arith.subf %27, %30 : vector<16x16xf32>
    %32 = math.exp %31 : vector<16x16xf32>
    %cst_12 = arith.constant dense<0.000000e+00> : vector<16xf32>
    %33 = vector.multi_reduction <add>, %32, %cst_12 [1] : vector<16x16xf32> to vector<16xf32>
    %34 = vector.shape_cast %33 : vector<16xf32> to vector<16x1xf32>
    %35 = tpu.reciprocal %34 : vector<16x1xf32> -> vector<16x1xf32>
    %36 = vector.broadcast %35 : vector<16x1xf32> to vector<16x16xf32>
    %37 = arith.mulf %32, %36 : vector<16x16xf32>
    %38 = vector.extract_strided_slice %9 {offsets = [0, 8], sizes = [16, 8], strides = [1, 1]} : vector<16x32xf32> to vector<16x8xf32>
    %cst_13 = arith.constant dense<0.000000e+00> : vector<16x8xf32>
    %39 = tpu.matmul %37, %38, %cst_13 {dimension_numbers = #tpu.dot_dimension_numbers<[1], [0], [0], [1], [0, 0, 1, 1], [], []>} : vector<16x16xf32>, vector<16x8xf32>, vector<16x8xf32> -> vector<16x8xf32>
    %40 = vector.extract_strided_slice %7 {offsets = [0, 16], sizes = [16, 8], strides = [1, 1]} : vector<16x32xf32> to vector<16x8xf32>
    %41 = vector.extract_strided_slice %8 {offsets = [0, 16], sizes = [16, 8], strides = [1, 1]} : vector<16x32xf32> to vector<16x8xf32>
    %cst_14 = arith.constant dense<0.000000e+00> : vector<16x16xf32>
    %42 = tpu.matmul %40, %41, %cst_14 {dimension_numbers = #tpu.dot_dimension_numbers<[1], [1], [0], [0], [0, 0, 1, 0], [], []>} : vector<16x8xf32>, vector<16x8xf32>, vector<16x16xf32> -> vector<16x16xf32>
    %cst_15 = arith.constant dense<0xFF800000> : vector<16xf32>
    %43 = vector.multi_reduction <maximumf>, %42, %cst_15 [1] : vector<16x16xf32> to vector<16xf32>
    %44 = vector.shape_cast %43 : vector<16xf32> to vector<16x1xf32>
    %45 = vector.broadcast %44 : vector<16x1xf32> to vector<16x16xf32>
    %46 = arith.subf %42, %45 : vector<16x16xf32>
    %47 = math.exp %46 : vector<16x16xf32>
    %cst_16 = arith.constant dense<0.000000e+00> : vector<16xf32>
    %48 = vector.multi_reduction <add>, %47, %cst_16 [1] : vector<16x16xf32> to vector<16xf32>
    %49 = vector.shape_cast %48 : vector<16xf32> to vector<16x1xf32>
    %50 = tpu.reciprocal %49 : vector<16x1xf32> -> vector<16x1xf32>
    %51 = vector.broadcast %50 : vector<16x1xf32> to vector<16x16xf32>
    %52 = arith.mulf %47, %51 : vector<16x16xf32>
    %53 = vector.extract_strided_slice %9 {offsets = [0, 16], sizes = [16, 8], strides = [1, 1]} : vector<16x32xf32> to vector<16x8xf32>
    %cst_17 = arith.constant dense<0.000000e+00> : vector<16x8xf32>
    %54 = tpu.matmul %52, %53, %cst_17 {dimension_numbers = #tpu.dot_dimension_numbers<[1], [0], [0], [1], [0, 0, 1, 1], [], []>} : vector<16x16xf32>, vector<16x8xf32>, vector<16x8xf32> -> vector<16x8xf32>
    %55 = vector.extract_strided_slice %7 {offsets = [0, 24], sizes = [16, 8], strides = [1, 1]} : vector<16x32xf32> to vector<16x8xf32>
    %56 = vector.extract_strided_slice %8 {offsets = [0, 24], sizes = [16, 8], strides = [1, 1]} : vector<16x32xf32> to vector<16x8xf32>
    %cst_18 = arith.constant dense<0.000000e+00> : vector<16x16xf32>
    %57 = tpu.matmul %55, %56, %cst_18 {dimension_numbers = #tpu.dot_dimension_numbers<[1], [1], [0], [0], [0, 0, 1, 0], [], []>} : vector<16x8xf32>, vector<16x8xf32>, vector<16x16xf32> -> vector<16x16xf32>
    %cst_19 = arith.constant dense<0xFF800000> : vector<16xf32>
    %58 = vector.multi_reduction <maximumf>, %57, %cst_19 [1] : vector<16x16xf32> to vector<16xf32>
    %59 = vector.shape_cast %58 : vector<16xf32> to vector<16x1xf32>
    %60 = vector.broadcast %59 : vector<16x1xf32> to vector<16x16xf32>
    %61 = arith.subf %57, %60 : vector<16x16xf32>
    %62 = math.exp %61 : vector<16x16xf32>
    %cst_20 = arith.constant dense<0.000000e+00> : vector<16xf32>
    %63 = vector.multi_reduction <add>, %62, %cst_20 [1] : vector<16x16xf32> to vector<16xf32>
    %64 = vector.shape_cast %63 : vector<16xf32> to vector<16x1xf32>
    %65 = tpu.reciprocal %64 : vector<16x1xf32> -> vector<16x1xf32>
    %66 = vector.broadcast %65 : vector<16x1xf32> to vector<16x16xf32>
    %67 = arith.mulf %62, %66 : vector<16x16xf32>
    %68 = vector.extract_strided_slice %9 {offsets = [0, 24], sizes = [16, 8], strides = [1, 1]} : vector<16x32xf32> to vector<16x8xf32>
    %cst_21 = arith.constant dense<0.000000e+00> : vector<16x8xf32>
    %69 = tpu.matmul %67, %68, %cst_21 {dimension_numbers = #tpu.dot_dimension_numbers<[1], [0], [0], [1], [0, 0, 1, 1], [], []>} : vector<16x16xf32>, vector<16x8xf32>, vector<16x8xf32> -> vector<16x8xf32>
    %70 = tpu.concatenate %24, %39, %54, %69 in 1 : vector<16x8xf32>, vector<16x8xf32>, vector<16x8xf32>, vector<16x8xf32> -> vector<16x32xf32>
    %c0_22 = arith.constant 0 : index
    %c0_23 = arith.constant 0 : index
    %71 = vector.load %arg4[%c0_22, %c0_23] : memref<32x32xf32, #tpu.memory_space<vmem>>, vector<32x32xf32>
    %cst_24 = arith.constant dense<0.000000e+00> : vector<16x32xf32>
    %72 = tpu.matmul %70, %71, %cst_24 {dimension_numbers = #tpu.dot_dimension_numbers<[1], [0], [0], [1], [0, 0, 1, 1], [], []>} : vector<16x32xf32>, vector<32x32xf32>, vector<16x32xf32> -> vector<16x32xf32>
    %c0_25 = arith.constant 0 : index
    %c0_26 = arith.constant 0 : index
    %73 = vector.load %arg6[%c0_25, %c0_26] : memref<1x32xf32, #tpu.memory_space<vmem>>, vector<1x32xf32>
    %74 = vector.broadcast %73 : vector<1x32xf32> to vector<16x32xf32>
    %75 = arith.addf %72, %74 : vector<16x32xf32>
    %76 = vector.shape_cast %75 : vector<16x32xf32> to vector<1x16x32xf32>
    %c0_27 = arith.constant 0 : index
    %c0_28 = arith.constant 0 : index
    %c0_29 = arith.constant 0 : index
    %77 = vector.load %arg7[%c0_27, %c0_28, %c0_29] : memref<1x16x32xf32, #tpu.memory_space<vmem>>, vector<1x16x32xf32>
    tpu.vector_store %arg7[%c0_27, %c0_28, %c0_29], %76 {strides = array<i32>} : memref<1x16x32xf32, #tpu.memory_space<vmem>>, vector<1x16x32xf32>,
    return
  }
  func.func @transform_0(%arg0: i32, %arg1: i32) -> (i32, i32, i32) {
    %c0_i32 = arith.constant 0 : i32
    %c0_i32_0 = arith.constant 0 : i32
    %c0_i32_1 = arith.constant 0 : i32
    return %arg0, %c0_i32, %c0_i32_0 : i32, i32, i32
  }
  func.func @transform_1(%arg0: i32, %arg1: i32) -> (i32, i32) {
    %c0_i32 = arith.constant 0 : i32
    %c0_i32_0 = arith.constant 0 : i32
    %c0_i32_1 = arith.constant 0 : i32
    return %c0_i32, %c0_i32_0 : i32, i32
  }
  func.func @transform_2(%arg0: i32, %arg1: i32) -> (i32, i32) {
    %c0_i32 = arith.constant 0 : i32
    %c0_i32_0 = arith.constant 0 : i32
    %c0_i32_1 = arith.constant 0 : i32
    return %c0_i32, %c0_i32_0 : i32, i32
  }
  func.func @transform_3(%arg0: i32, %arg1: i32) -> (i32, i32) {
    %c0_i32 = arith.constant 0 : i32
    %c0_i32_0 = arith.constant 0 : i32
    %c0_i32_1 = arith.constant 0 : i32
    return %c0_i32, %c0_i32_0 : i32, i32
  }
  func.func @transform_4(%arg0: i32, %arg1: i32) -> (i32, i32) {
    %c0_i32 = arith.constant 0 : i32
    %c0_i32_0 = arith.constant 0 : i32
    %c0_i32_1 = arith.constant 0 : i32
    return %c0_i32, %c0_i32_0 : i32, i32
  }
  func.func @transform_5(%arg0: i32, %arg1: i32) -> (i32, i32, i32) {
    %c0_i32 = arith.constant 0 : i32
    %c0_i32_0 = arith.constant 0 : i32
    return %arg0, %arg1, %c0_i32 : i32, i32, i32
  }
}

</mosaic_0001>

<bundles_post_ra>
// kernel: attention_forward.1
= control target key start
LH: loop header
LB: loop body
LE: loop exit
PB: predicated region body
PF: predicated region fallthrough
CT: control target
= control target key end

     0   :  { %10 = vsyncpa [#allocation3], 0  ;;  %s2086_s0 = inlined_call_operand.vmem [shape: f32[2,16,32], index: 0, kind: input, shape index: {}]   ;;  %s2087_s1 = inlined_call_operand.vmem [shape: f32[32,96], index: 1, kind: input, shape index: {}]   ;;  %s2088_s2 = inlined_call_operand.vmem [shape: f32[32,32], index: 2, kind: input, shape index: {}]   ;;  %s2089_s3 = inlined_call_operand.vmem [shape: f32[1,96], index: 3, kind: input, shape index: {}]   ;;  %s2090_s4 = inlined_call_operand.vmem [shape: f32[1,32], index: 4, kind: input, shape index: {}]   ;;  %s2091_s5 = inlined_call_operand.hbm [shape: f32[2,16,32], index: 5, kind: output, shape index: {}]  }
   0x1   :  { %12 = vsyncpa [#allocation3 + $0x1], 0  ;;  %s1838_s18 = smov 0   ;;  %s1840_s19 = smov 0  }
   0x2   :  { %s1842_s20 = smov 0   ;;  %s1844_s21 = smov 0  }
   0x3   :  { %s1846_s22 = smov 0   ;;  %s1848_s23 = smov 0  }
   0x4 LB: > { %s1347_s24 = sadd.s32 4294967295, %s1790_s23   ;;  %s1348_s25 = sadd.s32 4294967294, %s1790_s23   ;;  %s1790_s23 = sphi %s1848_s23, %s18_s23   ;;  %s1786_s22 = sphi %s1846_s22, %s2100_s22   ;;  %s1782_s21 = sphi %s1844_s21, %s2099_s21   ;;  %s1778_s20 = sphi %s1842_s20, %s2098_s20   ;;  %s1774_s19 = sphi %s1840_s19, %s2097_s19   ;;  %s1770_s18 = sphi %s1838_s18, %s2096_s18  }
   0x5   : > { %s30_s26 = sadd.s32 1, %s1786_s22  ;;  %s149_s27 = sadd.s32 1, %s1778_s20 }
   0x6   : > { %p32_p0 = scmp.ge.s32.totalorder %s30_s26, 2  ;;  %p159_p1 = scmp.ne.s32.totalorder %s1778_s20, %s1774_s19 }
   0x7   : > { %p160_p2 = scmp.eq.s32.totalorder %s1347_s24, 1  ;;  %p165_p3 = scmp.ne.s32.totalorder %s1774_s19, %s1770_s18 }
   0x8   : > { %s2102_s26 = smov (%p32_p0, %s30_s26), 0  ;;  %p166_p5 = scmp.eq.s32.totalorder %s1348_s25, 1 }
   0x9   : > { %p1878_p4 = por %p160_p2, %p159_p1  ;;  %s144_s29 = ssub.s32 %s1786_s22, %s2102_s26 }
   0xa   : > { %p1351_p6 = scmp.ge.s32.totalorder %s1790_s23, 1  ;;  %p147_p7 = scmp.eq.s32.totalorder %s144_s29, 0 }
   0xb   : > { %p1885_p8 = por %p166_p5, %p165_p3  ;;  %p204_p9 = scmp.lt.s32.totalorder %s1790_s23, 3 }
   0xc   : > { %s1891_s6 = scalar_select %p147_p7, %s1778_s20, %s149_s27  }
   0xd   : > { %p205_p10 = pnand %p1351_p6, %p204_p9 }
   0xe   : > { %v240_v0 = vld [vmem:[%s2087_s1] sm:$0xff] (!%p205_p10)  ;;  %v241_v1 = vld [vmem:[%s2087_s1 + $0x8] sm:$0xff] (!%p205_p10)  ;;  %v242_v2 = vld [vmem:[%s2087_s1 + $0x10] sm:$0xff] (!%p205_p10)  ;;  %p232_p11 = scmp.lt.s32.totalorder (!%p205_p10), %s1782_s21, 1  ;;  %vm251_vm0 = vcmask (!%p205_p10), 261120   ;;  %vm339_vm1 = vcmask (!%p205_p10), 64512  }
   0xf   : > { %208 = sbr.rel (%p205_p10) target bundleno = 3077 (0xc05), region = 40  ;;  %v1514_v3 = vpack.c.bf16 (!%p205_p10), %v241_v1, %v240_v0  ;;  %v243_v4 = vld [vmem:[%s2087_s1 + $0x18] sm:$0xff] (!%p205_p10)  ;;  %v1355_v8 = vld [vmem:[%s2089_s3] ss:$0 sm:$0xff] (!%p205_p10)  ;;  %s1792_s7 = smov (!%p205_p10), 96   ;;  %vm1928_vm2 = vmpackc.low (!%p205_p10), %vm339_vm1, %vm339_vm1  ;;  %vm423_vm3 = vcmask (!%p205_p10), 130048  }
  0x10   : > { %v1518_v5 = vpack.c.bf16 (!%p205_p10), %v243_v4, %v242_v2  ;;  %s1793_s8 = smov (!%p205_p10), 64   ;;  %s1794_s9 = smov (!%p205_p10), 88   ;;  %vm1161_vm4 = vcmask (!%p205_p10), 195584  }
  0x11   : > { %1515 = vmatprep.subr.bf16.mxu0 (!%p205_p10), %v1514_v3  ;;  %s1795_s10 = smov (!%p205_p10), 120   ;;  %s1796_s11 = smov (!%p205_p10), 56  }
  0x12   : > { %1517 = vmatpush3.bf16.msra.mxu0 (!%p205_p10), %v1514_v3  ;;  %s1797_s12 = smov (!%p205_p10), 80   ;;  %s1798_s13 = smov (!%p205_p10), 112  }
  0x13   : > { %1519 = vmatprep.subr.bf16.mxu0 (!%p205_p10), %v1518_v5  ;;  %s1799_s14 = smov (!%p205_p10), 72   ;;  %s1802_s17 = smov (!%p205_p10), 8  }
  0x14   : > { %s1803_s24 = smov (!%p205_p10), 40   ;;  %s1391_s29 = sshll.u32 (!%p205_p10), %s1782_s21, 8 }
  0x16   : > { %s233_s15 = scalar_select %p232_p11, %s1782_s21, 1  ;;  %1521 = vmatpush3.bf16.msra.mxu0 %v1518_v5 }
  0x18   : > { %s1390_s16 = sshll.u32 %s233_s15, 4  ;;  %s1800_s15 = smov 104  }
  0x19   : > { %s236_s25 = scalar_lea.vmem %s2086_s0, %s1390_s16  ;;  %s1801_s16 = smov 48  }
  0x1a   : > { %v238_v6 = vld [vmem:[%s236_s25] sm:$0xff]  ;;  %v239_v7 = vld [vmem:[%s236_s25 + $0x8] sm:$0xff]  ;;  %s1804_s25 = smov 16  }
  0x1b   : > { %1444 = vmatprep.mubr.msk.f32.mxu0 %vm251_vm0, %v238_v6 }
  0x1c   : > { %1445 = vmatmul.mubr.msk.f32.vlgmr.msra.gmra.mrb[0].mxu0 %vm251_vm0, %v239_v7 }
  0xef   : > { %v1446_v9 = vpop.f32.mrb[0].mxu0 }
  0xf0   : > { %v1915_v10 = vadd.f32 %v1446_v9, %v1355_v8  ;;  %v324_v11 = vpop.f32.mrb[1].mxu0 }
  0xf1   : > { %v1917_v12 = vadd.f32 %v1355_v8, %v324_v11 }
  0xf3   : > { %1451 = vmatprep.mubr.msk.f32.mxu1 %vm339_vm1, %v1917_v12  ;;  %v1923_v13 = vpack.i.bf16 %v1915_v10, %v1917_v12 }
  0xf5   : > { %1641 = vrot.lane.b32.xlu0 %v1923_v13, %s1792_s7 }
 0x167   : > { %v1642_v14 = vpop.permute.xlu0 %1641 }
 0x168   : > { %v1644_v15 = vunpack.i.h.bf16 %v1642_v14  ;;  %v1643_v16 = vunpack.i.l.bf16 %v1642_v14 }
 0x16a   : > { %v1522_v18 = vpack.c.bf16 %v1644_v15, %v1643_v16 }
 0x16c   : > { %1524 = vmatprep.subr.msk.bf16.mxu1 %vm1928_vm2, %v1522_v18 }
 0x16d   : > { %1527 = vmatpush3.bf16.xpose.msk.msra.mxu1 %vm1928_vm2, %v1522_v18 }
 0x174   : > { %1452 = vmatmul.mubr.msk.f32.vlgmr.msra.gmra.mrb[0].mxu1 %vm339_vm1, %v1915_v10 }
 0x247   : > { %v1453_v19 = vpop.f32.mrb[0].mxu1 }
 0x248   : > { %v414_v20 = vpop.f32.mrb[1].mxu1  ;;  %v427_v21 = vsel %vm423_vm3, %v1453_v19, -inf }
 0x249   : > { %428 = vmax.xlane.f32.xlu1 %v427_v21  ;;  %v424_v22 = vsel %vm423_vm3, %v414_v20, -inf }
 0x24a   : > { %425 = vmax.xlane.f32.xlu0 %v424_v22 }
 0x25a   : > { %1646 = vrot.lane.b32.xlu1 %v1923_v13, %s1793_s8 }
 0x25e   : > { %1651 = vrot.lane.b32.xlu1 %v1923_v13, %s1794_s9  ;;  %s2035_s9 = scalar_lea.hbm %s2091_s5, %s1391_s29 }
 0x260   : > { %535 = vrot.lane.b32.xlu0 %v1915_v10, %s1795_s10 }
 0x2d6   : > { %v429_v23 = vpop.xlane.xlu1 %428 }
 0x2d7   : > { %v431_v24 = vsub.f32 %v1453_v19, %v429_v23  ;;  %v426_v25 = vpop.xlane.xlu0 %425 }
 0x2d8   : > { %v430_v26 = vsub.f32 %v414_v20, %v426_v25 }
 0x2d9   : > { %v434_v27 = vmul.f32 1.442695, %v431_v24 }
 0x2da   : > { %v432_v28 = vmul.f32 1.442695, %v430_v26  ;;  %v1647_v29 = vpop.permute.xlu1 %1646 }
 0x2db   : > { %1680 = vpow2.f32 %v434_v27  ;;  %v1649_v30 = vunpack.i.h.bf16 %v1647_v29  ;;  %v1648_v31 = vunpack.i.l.bf16 %v1647_v29  ;;  %v536_v48 = vpop.permute.xlu0 %535 }
 0x2dc   : > { %1682 = vpow2.f32 %v432_v28 }
 0x2dd   : > { %v1528_v32 = vpack.c.bf16 %v1649_v30, %v1648_v31 }
 0x2de   : > { %v1652_v33 = vpop.permute.xlu1 %1651 }
 0x2df   : > { %v1654_v34 = vunpack.i.h.bf16 %v1652_v33  ;;  %v1653_v35 = vunpack.i.l.bf16 %v1652_v33  ;;  %1529 = vmatprep.subr.bf16.mxu1 %v1528_v32 }
 0x2e0   : > { %1531 = vmatpush3.bf16.msra.mxu1 %v1528_v32 }
 0x2e1   : > { %v1532_v36 = vpack.c.bf16 %v1654_v34, %v1653_v35 }
 0x2e3   : > { %1534 = vmatprep.subr.msk.bf16.mxu1 %vm1928_vm2, %v1532_v36 }
 0x2e5   : > { %v1681_v37 = vpop.eup %1680 }
 0x2e6   : > { %v439_v38 = vsel %vm423_vm3, %v1681_v37, 0.0  ;;  %v1683_v39 = vpop.eup %1682 }
 0x2e7   : > { %440 = vadd.xlane.f32.xlu1 %v439_v38  ;;  %v436_v40 = vsel %vm423_vm3, %v1683_v39, 0.0 }
 0x2eb   : > { %437 = vadd.xlane.f32.xlu1 %v436_v40 }
 0x2fc   : > { %533 = vrot.lane.b32.xlu1 %v1917_v12, %s1795_s10 }
 0x374   : > { %v441_v41 = vpop.xlane.xlu1 %440 }
 0x375   : > { %1684 = vrcp.f32 %v441_v41 }
 0x378   : > { %v438_v42 = vpop.xlane.xlu1 %437 }
 0x379   : > { %1686 = vrcp.f32 %v438_v42 }
 0x37c   : > { %v534_v47 = vpop.permute.xlu1 %533 }
 0x37f   : > { %v1685_v43 = vpop.eup %1684 }
 0x380   : > { %v445_v46 = vmul.f32 %v1685_v43, %v1681_v37 }
 0x383   : > { %v1687_v44 = vpop.eup %1686 }
 0x384   : > { %v444_v45 = vmul.f32 %v1687_v44, %v1683_v39 }
 0x386   : > { %1458 = vmatprep.mubr.msk.f32.mxu1 %vm423_vm3, %v444_v45 }
 0x387   : > { %1459 = vmatmul.mubr.msk.f32.vlgmr.msra.gmra.mrb[2].mxu1 %vm423_vm3, %v445_v46 }
 0x388   : > { %1537 = vmatpush3.bf16.xpose.msk.msra.mxu1 %vm1928_vm2, %v1532_v36  ;;  %1465 = vmatprep.mubr.msk.f32.mxu1 %vm339_vm1, %v534_v47 }
 0x38f   : > { %1466 = vmatmul.mubr.msk.f32.vlgmr.msra.gmra.mrb[4].mxu1 %vm339_vm1, %v536_v48 }
 0x45a   : > { %v1954_v49 = vpop.f32.mrb[2].mxu1 }
 0x45b   : > { %v1956_v50 = vpop.f32.mrb[3].mxu1 }
 0x462   : > { %v1467_v51 = vpop.f32.mrb[4].mxu1 }
 0x463   : > { %v615_v52 = vpop.f32.mrb[5].mxu1  ;;  %v627_v53 = vsel %vm423_vm3, %v1467_v51, -inf }
 0x464   : > { %628 = vmax.xlane.f32.xlu0 %v627_v53  ;;  %v624_v54 = vsel %vm423_vm3, %v615_v52, -inf }
 0x465   : > { %625 = vmax.xlane.f32.xlu1 %v624_v54 }
 0x476   : > { %1656 = vrot.lane.b32.xlu1 %v1923_v13, %s1796_s11  ;;  %s1806_s11 = smov [#allocation2]  }
 0x47a   : > { %1661 = vrot.lane.b32.xlu0 %v1923_v13, %s1797_s12  ;;  %733 = vrot.lane.b32.xlu1 %v1917_v12, %s1798_s13  ;;  %s1716_s12 = sshll.u32 %s1806_s11, 4  ;;  %s1717_s12 = int_to_ptr.vmem [resolvable:$false] %s1716_s12 }
 0x4f1   : > { %v629_v55 = vpop.xlane.xlu0 %628 }
 0x4f2   : > { %v631_v56 = vsub.f32 %v1467_v51, %v629_v55  ;;  %v626_v57 = vpop.xlane.xlu1 %625 }
 0x4f3   : > { %v630_v58 = vsub.f32 %v615_v52, %v626_v57 }
 0x4f4   : > { %v634_v59 = vmul.f32 1.442695, %v631_v56 }
 0x4f5   : > { %v632_v60 = vmul.f32 1.442695, %v630_v58  ;;  %v1662_v61 = vpop.permute.xlu0 %1661 }
 0x4f6   : > { %1688 = vpow2.f32 %v634_v59  ;;  %v1657_v62 = vpop.permute.xlu1 %1656  ;;  %v1664_v63 = vunpack.i.h.bf16 %v1662_v61  ;;  %v1663_v0 = vunpack.i.l.bf16 %v1662_v61 }
 0x4f7   : > { %v1659_v1 = vunpack.i.h.bf16 %v1657_v62  ;;  %v1658_v2 = vunpack.i.l.bf16 %v1657_v62  ;;  %1690 = vpow2.f32 %v632_v60 }
 0x4f8   : > { %v1542_v4 = vpack.c.bf16 %v1664_v63, %v1663_v0 }
 0x4f9   : > { %v1538_v3 = vpack.c.bf16 %v1659_v1, %v1658_v2 }
 0x4fa   : > { %v734_v9 = vpop.permute.xlu1 %733 }
 0x4fb   : > { %1539 = vmatprep.subr.bf16.mxu0 %v1538_v3 }
 0x4fc   : > { %1541 = vmatpush3.bf16.msra.mxu0 %v1538_v3 }
 0x4fd   : > { %1544 = vmatprep.subr.msk.bf16.mxu0 %vm1928_vm2, %v1542_v4 }
 0x500   : > { %v1689_v5 = vpop.eup %1688 }
 0x501   : > { %v639_v6 = vsel %vm423_vm3, %v1689_v5, 0.0  ;;  %v1691_v7 = vpop.eup %1690 }
 0x502   : > { %640 = vadd.xlane.f32.xlu1 %v639_v6  ;;  %v636_v8 = vsel %vm423_vm3, %v1691_v7, 0.0 }
 0x506   : > { %637 = vadd.xlane.f32.xlu1 %v636_v8 }
 0x517   : > { %735 = vrot.lane.b32.xlu1 %v1915_v10, %s1798_s13  ;;  %s1805_s13 = smov 24  }
 0x58f   : > { %v641_v11 = vpop.xlane.xlu1 %640 }
 0x590   : > { %1692 = vrcp.f32 %v641_v11 }
 0x593   : > { %v638_v14 = vpop.xlane.xlu1 %637 }
 0x594   : > { %1694 = vrcp.f32 %v638_v14 }
 0x597   : > { %v736_v20 = vpop.permute.xlu1 %735 }
 0x59a   : > { %v1693_v15 = vpop.eup %1692 }
 0x59b   : > { %v645_v19 = vmul.f32 %v1693_v15, %v1689_v5 }
 0x59e   : > { %v1695_v16 = vpop.eup %1694 }
 0x59f   : > { %v644_v18 = vmul.f32 %v1695_v16, %v1691_v7 }
 0x5a1   : > { %1472 = vmatprep.mubr.msk.f32.mxu0 %vm423_vm3, %v644_v18  ;;  %v1165_v18 = vld [vmem:[%s2088_s2 + $0x8] sm:$0xff] }
 0x5a2   : > { %1473 = vmatmul.mubr.msk.f32.vlgmr.msra.gmra.mrb[2].mxu0 %vm423_vm3, %v645_v19  ;;  %v1166_v19 = vld [vmem:[%s2088_s2 + $0x10] sm:$0xff] }
 0x5a3   : > { %1547 = vmatpush3.bf16.xpose.msk.msra.mxu0 %vm1928_vm2, %v1542_v4  ;;  %1479 = vmatprep.mubr.msk.f32.mxu0 %vm339_vm1, %v734_v9 }
 0x5aa   : > { %1480 = vmatmul.mubr.msk.f32.vlgmr.msra.gmra.mrb[4].mxu0 %vm339_vm1, %v736_v20 }
 0x675   : > { %v1974_v21 = vpop.f32.mrb[2].mxu0 }
 0x676   : > { %v1976_v22 = vpop.f32.mrb[3].mxu0 }
 0x67d   : > { %v1481_v23 = vpop.f32.mrb[4].mxu0 }
 0x67e   : > { %v815_v24 = vpop.f32.mrb[5].mxu0  ;;  %v827_v25 = vsel %vm423_vm3, %v1481_v23, -inf }
 0x67f   : > { %828 = vmax.xlane.f32.xlu0 %v827_v25  ;;  %v824_v26 = vsel %vm423_vm3, %v815_v24, -inf }
 0x680   : > { %825 = vmax.xlane.f32.xlu1 %v824_v26 }
 0x70c   : > { %v829_v27 = vpop.xlane.xlu0 %828 }
 0x70d   : > { %v831_v28 = vsub.f32 %v1481_v23, %v829_v27  ;;  %v826_v29 = vpop.xlane.xlu1 %825 }
 0x70e   : > { %v830_v30 = vsub.f32 %v815_v24, %v826_v29 }
 0x70f   : > { %v834_v31 = vmul.f32 1.442695, %v831_v28 }
 0x710   : > { %v832_v32 = vmul.f32 1.442695, %v830_v30 }
 0x711   : > { %1696 = vpow2.f32 %v834_v31 }
 0x712   : > { %1698 = vpow2.f32 %v832_v32 }
 0x71b   : > { %v1697_v33 = vpop.eup %1696 }
 0x71c   : > { %v1699_v34 = vpop.eup %1698  ;;  %v839_v35 = vsel %vm423_vm3, %v1697_v33, 0.0 }
 0x71d   : > { %840 = vadd.xlane.f32.xlu1 %v839_v35  ;;  %v836_v36 = vsel %vm423_vm3, %v1699_v34, 0.0 }
 0x71e   : > { %837 = vadd.xlane.f32.xlu0 %v836_v36 }
 0x72e   : > { %1671 = vrot.lane.b32.xlu1 %v1923_v13, %s1799_s14  ;;  %s229_s14 = sand.u32 1, %s1774_s19  }
 0x72f   : > { %s2039_s10 = scalar_lea.sflag [#allocation3], %s229_s14 }
 0x732   : > { %933 = vrot.lane.b32.xlu1 %v1917_v12, %s1800_s15 }
 0x734   : > { %1666 = vrot.lane.b32.xlu0 %v1923_v13, %s1801_s16 }
 0x738   : > { %935 = vrot.lane.b32.xlu0 %v1915_v10, %s1800_s15  ;;  %s1352_s15 = sshll.u32 %s229_s14, 4 }
 0x7aa   : > { %v841_v37 = vpop.xlane.xlu1 %840 }
 0x7ab   : > { %1700 = vrcp.f32 %v841_v37  ;;  %v838_v38 = vpop.xlane.xlu0 %837 }
 0x7ac   : > { %1702 = vrcp.f32 %v838_v38 }
 0x7ae   : > { %v1672_v39 = vpop.permute.xlu1 %1671 }
 0x7af   : > { %v1667_v40 = vpop.permute.xlu0 %1666  ;;  %v1674_v41 = vunpack.i.h.bf16 %v1672_v39  ;;  %v1673_v42 = vunpack.i.l.bf16 %v1672_v39 }
 0x7b0   : > { %v1669_v43 = vunpack.i.h.bf16 %v1667_v40  ;;  %v1668_v44 = vunpack.i.l.bf16 %v1667_v40 }
 0x7b1   : > { %v1552_v46 = vpack.c.bf16 %v1674_v41, %v1673_v42 }
 0x7b2   : > { %v1548_v45 = vpack.c.bf16 %v1669_v43, %v1668_v44  ;;  %v934_v51 = vpop.permute.xlu1 %933 }
 0x7b3   : > { %v936_v52 = vpop.permute.xlu0 %935 }
 0x7b4   : > { %1549 = vmatprep.subr.bf16.mxu1 %v1548_v45 }
 0x7b5   : > { %v1701_v47 = vpop.eup %1700  ;;  %1551 = vmatpush3.bf16.msra.mxu1 %v1548_v45 }
 0x7b6   : > { %v1703_v12 = vpop.eup %1702  ;;  %1554 = vmatprep.subr.msk.bf16.mxu1 %vm1928_vm2, %v1552_v46  ;;  %v845_v48 = vmul.f32 %v1701_v47, %v1697_v33 }
 0x7b7   : > { %v844_v10 = vmul.f32 %v1703_v12, %v1699_v34 }
 0x7b9   : > { %1486 = vmatprep.mubr.msk.f32.mxu1 %vm423_vm3, %v844_v10 }
 0x7ba   : > { %1487 = vmatmul.mubr.msk.f32.vlgmr.msra.gmra.mrb[6].mxu1 %vm423_vm3, %v845_v48 }
 0x7bb   : > { %1493 = vmatprep.mubr.msk.f32.mxu1 %vm339_vm1, %v934_v51 }
 0x7be   : > { %1557 = vmatpush3.bf16.xpose.msk.msra.mxu1 %vm1928_vm2, %v1552_v46 }
 0x7c5   : > { %1494 = vmatmul.mubr.msk.f32.vlgmr.msra.gmra.mrb[8].mxu1 %vm339_vm1, %v936_v52 }
 0x88d   : > { %v1488_v53 = vpop.f32.mrb[6].mxu1 }
 0x88e   : > { %v924_v54 = vpop.f32.mrb[7].mxu1 }
 0x898   : > { %v1495_v55 = vpop.f32.mrb[8].mxu1 }
 0x899   : > { %v1015_v56 = vpop.f32.mrb[9].mxu1  ;;  %v1027_v57 = vsel %vm423_vm3, %v1495_v55, -inf }
 0x89a   : > { %1028 = vmax.xlane.f32.xlu0 %v1027_v57  ;;  %v1024_v58 = vsel %vm423_vm3, %v1015_v56, -inf }
 0x89b   : > { %1025 = vmax.xlane.f32.xlu1 %v1024_v58 }
 0x927   : > { %v1029_v59 = vpop.xlane.xlu0 %1028 }
 0x928   : > { %v1031_v60 = vsub.f32 %v1495_v55, %v1029_v59  ;;  %v1026_v61 = vpop.xlane.xlu1 %1025 }
 0x929   : > { %v1030_v62 = vsub.f32 %v1015_v56, %v1026_v61 }
 0x92a   : > { %v1034_v63 = vmul.f32 1.442695, %v1031_v60 }
 0x92b   : > { %v1032_v17 = vmul.f32 1.442695, %v1030_v62 }
 0x92c   : > { %1704 = vpow2.f32 %v1034_v63 }
 0x92d   : > { %1706 = vpow2.f32 %v1032_v17 }
 0x936   : > { %v1705_v0 = vpop.eup %1704 }
 0x937   : > { %v1707_v1 = vpop.eup %1706  ;;  %v1039_v2 = vsel %vm423_vm3, %v1705_v0, 0.0 }
 0x938   : > { %1040 = vadd.xlane.f32.xlu1 %v1039_v2  ;;  %v1036_v3 = vsel %vm423_vm3, %v1707_v1, 0.0 }
 0x939   : > { %1037 = vadd.xlane.f32.xlu0 %v1036_v3 }
 0x949   : > { %1135 = vrot.lane.b32.xlu1 %v1976_v22, %s1802_s17 }
 0x94d   : > { %1137 = vrot.lane.b32.xlu1 %v1974_v21, %s1802_s17  ;;  %v1167_v21 = vld [vmem:[%s2088_s2 + $0x18] sm:$0xff] }
 0x94e   : > { %v1566_v22 = vpack.c.bf16 %v1167_v21, %v1166_v19 }
 0x94f   : > { %1676 = vrot.lane.b32.xlu0 %v1923_v13, %s1803_s24  ;;  %v1164_v13 = vld [vmem:[%s2088_s2] sm:$0xff] }
 0x950   : > { %v1562_v20 = vpack.c.bf16 %v1165_v18, %v1164_v13 }
 0x951   : > { %1145 = vrot.lane.b32.xlu1 %v1488_v53, %s1804_s25 }
 0x953   : > { %1143 = vrot.lane.b32.xlu0 %v924_v54, %s1804_s25  ;;  %s231_s25 = scalar_lea.vmem [#allocation2], %s1352_s15 }
 0x954   : > { %s1274_s27 = sshll.u32 %s231_s25, 4  ;;  %s2030_s27 = int_to_ptr.vmem [resolvable:$true] %s1274_s27 }
 0x955   : > { %s1712_s21 = scalar_lea.vmem %s2030_s27, 256  ;;  %p1719_p1 = scmp.lt.s32.totalorder %s2030_s27, %s1717_s12 }
 0x956   : > { %p1713_p12 = scmp.ne.s32.totalorder %s2030_s27, %s1712_s21 }
 0x958   : > { %p1714_p13 = pnand %p1713_p12, %p1878_p4 }
 0x95a   : > { %p1715_p0 = pneg %p1714_p13 }
 0x9c5   : > { %v1041_v4 = vpop.xlane.xlu1 %1040 }
 0x9c6   : > { %1708 = vrcp.f32 %v1041_v4  ;;  %v1038_v5 = vpop.xlane.xlu0 %1037 }
 0x9c7   : > { %1710 = vrcp.f32 %v1038_v5 }
 0x9c9   : > { %v1136_v25 = vpop.permute.xlu1 %1135 }
 0x9ca   : > { %v1677_v6 = vpop.permute.xlu0 %1676  ;;  %v1157_v29 = vsel %vm339_vm1, %v1956_v50, %v1136_v25  ;;  %v1382_v50 = vld [vmem:[%s2090_s4] ss:$0 sm:$0xff] }
 0x9cb   : > { %v1679_v7 = vunpack.i.h.bf16 %v1677_v6  ;;  %v1678_v8 = vunpack.i.l.bf16 %v1677_v6 }
 0x9cd   : > { %v1558_v9 = vpack.c.bf16 %v1679_v7, %v1678_v8  ;;  %v1138_v26 = vpop.permute.xlu1 %1137 }
 0x9ce   : > { %v1144_v28 = vpop.permute.xlu0 %1143  ;;  %v1158_v31 = vsel %vm339_vm1, %v1954_v49, %v1138_v26 }
 0x9cf   : > { %1559 = vmatprep.subr.bf16.mxu0 %v1558_v9  ;;  %v1159_v32 = vsel %vm423_vm3, %v1157_v29, %v1144_v28 }
 0x9d0   : > { %v1709_v11 = vpop.eup %1708  ;;  %1561 = vmatpush3.bf16.msra.mxu0 %v1558_v9 }
 0x9d1   : > { %v1711_v14 = vpop.eup %1710  ;;  %v1045_v16 = vmul.f32 %v1709_v11, %v1705_v0  ;;  %1563 = vmatprep.subr.bf16.mxu0 %v1562_v20  ;;  %v1146_v27 = vpop.permute.xlu1 %1145 }
 0x9d2   : > { %v1044_v15 = vmul.f32 %v1711_v14, %v1707_v1  ;;  %v1160_v34 = vsel %vm423_vm3, %v1158_v31, %v1146_v27 }
 0x9d4   : > { %1500 = vmatprep.mubr.msk.f32.mxu0 %vm423_vm3, %v1044_v15 }
 0x9d5   : > { %1501 = vmatmul.mubr.msk.f32.vlgmr.msra.gmra.mrb[6].mxu0 %vm423_vm3, %v1045_v16 }
 0x9d6   : > { %1565 = vmatpush3.bf16.msra.mxu0 %v1562_v20 }
 0x9d7   : > { %1567 = vmatprep.subr.bf16.mxu0 %v1566_v22 }
 0x9da   : > { %1569 = vmatpush3.bf16.msra.mxu0 %v1566_v22 }
 0xaa8   : > { %v1502_v23 = vpop.f32.mrb[6].mxu0 }
 0xaa9   : > { %1153 = vrot.lane.b32.xlu1 %v1502_v23, %s1805_s13  ;;  %v1124_v24 = vpop.f32.mrb[7].mxu0 }
 0xaaa   : > { %1151 = vrot.lane.b32.xlu0 %v1124_v24, %s1805_s13  ;;  %s1718_s13 = scalar_lea.vmem %s1717_s12, 512 }
 0xaab   : > { %p1720_p2 = scmp.lt.s32.totalorder %s1718_s13, %s1712_s21 }
 0xaad   : > { %p1721_p3 = por %p1720_p2, %p1719_p1 }
 0xaaf   : > { %p1722_p5 = pnand %p1721_p3, %p1715_p0 }
 0xb1b   : > { %v1154_v30 = vpop.permute.xlu1 %1153 }
 0xb1c   : > { %v1152_v33 = vpop.permute.xlu0 %1151  ;;  %v1163_v36 = vsel %vm1161_vm4, %v1160_v34, %v1154_v30 }
 0xb1d   : > { %v1162_v35 = vsel %vm1161_vm4, %v1159_v32, %v1152_v33 }
 0xb1e   : > { %1511 = vmatprep.mubr.msk.f32.mxu0 %vm251_vm0, %v1162_v35 }
 0xb1f   : > { %1512 = vmatmul.mubr.msk.f32.vlgmr.msra.gmra.mrb[8].mxu0 %vm251_vm0, %v1163_v36 }
 0xbf2   : > { %v1513_v49 = vpop.f32.mrb[8].mxu0 }
 0xbf3   : > { %v1253_v37 = vadd.f32 %v1513_v49, %v1382_v50  ;;  %v1247_v38 = vpop.f32.mrb[9].mxu0 }
 0xbf4   : > { %v1248_v39 = vadd.f32 %v1382_v50, %v1247_v38 }
 0xbf5   : > { %1257 = vst.msk [vmem:[%s231_s25 + $0x8] sm:$0xff] %vm251_vm0, %v1253_v37 }
 0xbf6   : > { %1256 = vst.msk [vmem:[%s231_s25] sm:$0xff] %vm251_vm0, %v1248_v39 }
 0xbf7   : > { %1725 = shalt.err (!%p1722_p5)
}
 0xbf8   : > { %s1726_s14 = scalar_lea.hbm %s2035_s9, 256  ;;  %s1730_s24 = scalar_lea.hbm %s2091_s5, 512 }
 0xbf9   : > { %p1727_p6 = scmp.ne.s32.totalorder %s2035_s9, %s1726_s14  ;;  %p1731_p10 = scmp.lt.u32.totalorder %s2035_s9, %s2091_s5 }
 0xbfa   : > { %p1732_p11 = scmp.lt.u32.totalorder %s1730_s24, %s1726_s14  ;;  %p1734_p13 = scmp.lt.u32.totalorder %s1726_s14, %s2035_s9 }
 0xbfb   : > { %p1728_p7 = pnand %p1727_p6, %p1878_p4 }
 0xbfc   : > { %p1733_p12 = por %p1732_p11, %p1731_p10 }
 0xbfd   : > { %p1729_p9 = pneg %p1728_p7 }
 0xbfe   : > { %p1735_p0 = por %p1734_p13, %p1733_p12 }
 0xc00   : > { %p1736_p1 = pnand %p1735_p0, %p1729_p9 }
 0xc02   : > { %1739 = shalt.err (!%p1736_p1)
}
 0xc03   : > { %s1807_s7 = smov 128  }
 0xc04   : > { %1570 = dma.vmem_to_hbm [thread:$0]  (%p1878_p4), %s2030_s27, 256, %s2035_s9, %s2039_s10, %s1807_s7, %s1807_s7, %s1802_s17  }
 0xc05 PF: > { %p1576_p2 = scmp.ge.s32.totalorder %s1790_s23, 2  ;;  %s1289_s8 = sand.u32 1, %s1770_s18  }
 0xc06   : > { %s1290_s21 = scalar_lea.sflag [#allocation3], %s1289_s8 }
 0xc07   : > { %p1573_p3 = pnand %p1576_p2, %p1885_p8 }
 0xc09   : > { %1765 = dma.done.wait (!%p1573_p3), %s1290_s21, 256  }
 0xc0a   : > { %1767 = vsyncadd (!%p1573_p3), %s1290_s21, 4294967040  ;;  %s18_s23 = sadd.s32 1, %s1790_s23   ;;  %s2096_s18 = smov %s1774_s19 }
 0xc0b   : > { %p15_p5 = scmp.ge.s32.totalorder %s18_s23, 4   ;;  %s2097_s19 = smov %s1778_s20 }
 0xc0c   : > { %s2098_s20 = smov %s1891_s6  ;;  %s2099_s21 = smov %s1786_s22 }
 0xc0d   : > { %s2100_s22 = smov %s2102_s26  ;;  %17 = sbr.rel (!%p15_p5) target bundleno = 4 (0x4), region = 75 }
 0xc14   :  { %1295 = vsyncpa [#allocation3], 1 }
 0xc15   :  { %1297 = vsyncpa [#allocation3 + $0x1], 1 }

</bundles_post_ra>
